<compile_context>
chip_gen: v7x
topology: tpu7x:2x2x1
jax: 0.10.0
libtpu: 0.0.40
codegen_flags: <defaults>
</compile_context>

<pallas_src>
from functools import partial

import jax
import jax.numpy as jnp
from jax.experimental import pallas as pl
from jax.experimental.pallas import tpu as pltpu

D_W = 600      # width of `w`
D_REF = 3      # width of `ref`
D_H = 30       # l1 output
D_OUT = 3      # l2 output


def comp_kernel(w_ref, ref_ref, w1w_ref, w1r_ref, b1_ref,
                w2h_ref, w2r_ref, b2_ref, out_ref):
    ref_v = ref_ref[...]                                   # (TB, 3)

    # h = relu( w @ W1w^T + ref @ W1r^T + b1 )
    # Heavy K=600 matmul on the MXU:
    h = jnp.dot(w_ref[...], w1w_ref[...], preferred_element_type=jnp.float32)
    h = h + b1_ref[...]
    # K=3 skip term as 3 unrolled VPU broadcast-FMAs (keeps the MXU slot free):
    w1r = w1r_ref[...]                                     # (3, 30)
    for k in range(D_REF):
        h = h + ref_v[:, k:k + 1] * w1r[k:k + 1, :]
    h = jnp.maximum(h, 0.0)

    # out = h @ W2h^T + ref @ W2r^T + b2
    out = jnp.dot(h, w2h_ref[...], preferred_element_type=jnp.float32)
    out = out + b2_ref[...]
    w2r = w2r_ref[...]                                     # (3, 3)
    for k in range(D_REF):
        out = out + ref_v[:, k:k + 1] * w2r[k:k + 1, :]

    out_ref[...] = out.astype(out_ref.dtype)


@partial(jax.jit, static_argnames=("tb",))
def comp_model_pallas(w, ref, params, tb=2048):
    """w: (B, 600) f32, ref: (B, 3) f32 -> (B, 3) f32."""
    B = w.shape[0]
    w1, b1, w2, b2 = params["w1"], params["b1"], params["w2"], params["b2"]

    # Split + pre-transpose weights so the kernel does plain (B,K)@(K,N) matmuls.
    # (Runs once per jit compile / is fused by XLA — not in the per-call hot path.)
    w1w_t = jnp.transpose(w1[:, :D_W])        # (600, 30)
    w1r = jnp.transpose(w1[:, D_W:])          # (3, 30)
    w2h_t = jnp.transpose(w2[:, :D_H])        # (30, 3)
    w2r = jnp.transpose(w2[:, D_H:])          # (3, 3)
    b1_2d = b1.reshape(1, D_H)                # (1, 30)
    b2_2d = b2.reshape(1, D_OUT)              # (1, 3)

    # Batch tiling: one grid axis over batch, double-buffered HBM streaming of `w`.
    if B <= tb:
        TB = B                                # block == full array -> always legal
        Bp = B
    else:
        TB = tb                               # multiple of 8 (sublane constraint)
        Bp = pl.cdiv(B, TB) * TB
        pad = Bp - B
        w = jnp.pad(w, ((0, pad), (0, 0)))
        ref = jnp.pad(ref, ((0, pad), (0, 0)))
    grid = (Bp // TB,)

    keep = lambda i: (0, 0)                   # weights / biases stay resident
    out = pl.pallas_call(
        comp_kernel,
        out_shape=jax.ShapeDtypeStruct((Bp, D_OUT), jnp.float32),
        grid=grid,
        in_specs=[
            pl.BlockSpec((TB, D_W), lambda i: (i, 0)),     # w     (streamed)
            pl.BlockSpec((TB, D_REF), lambda i: (i, 0)),   # ref   (streamed)
            pl.BlockSpec((D_W, D_H), keep),                # W1w^T
            pl.BlockSpec((D_REF, D_H), keep),              # W1r^T
            pl.BlockSpec((1, D_H), keep),                  # b1
            pl.BlockSpec((D_H, D_OUT), keep),              # W2h^T
            pl.BlockSpec((D_REF, D_OUT), keep),            # W2r^T
            pl.BlockSpec((1, D_OUT), keep),                # b2
        ],
        out_specs=pl.BlockSpec((TB, D_OUT), lambda i: (i, 0)),
        compiler_params=pltpu.CompilerParams(
            dimension_semantics=("parallel",),             # megacore split on v7x
            vmem_limit_bytes=32 * 1024 * 1024,             # safe on v5e/v6e/v7x
        ),
    )(w, ref, w1w_t, w1r, b1_2d, w2h_t, w2r, b2_2d)

    if Bp != B:
        out = out[:B]
    return out


def comp_model_ref(w, ref, params):
    """Pure-JAX reference matching the PyTorch forward exactly."""
    w_ref = jnp.concatenate((w, ref), axis=1)                      # (B, 603)
    h = jax.nn.relu(w_ref @ params["w1"].T + params["b1"])         # (B, 30)
    h_ref = jnp.concatenate((h, ref), axis=1)                      # (B, 33)
    return h_ref @ params["w2"].T + params["b2"]                   # (B, 3)


def init_params(key):
    """Deterministic init mimicking nn.Linear default (U[-1/sqrt(fan_in), +])."""
    k1, k2, k3, k4 = jax.random.split(key, 4)
    bound1 = 1.0 / jnp.sqrt(float(D_W + D_REF))   # fan_in = 603
    bound2 = 1.0 / jnp.sqrt(float(D_H + D_REF))   # fan_in = 33
    return {
        "w1": jax.random.uniform(k1, (D_H, D_W + D_REF), jnp.float32, -bound1, bound1),
        "b1": jax.random.uniform(k2, (D_H,), jnp.float32, -bound1, bound1),
        "w2": jax.random.uniform(k3, (D_OUT, D_H + D_REF), jnp.float32, -bound2, bound2),
        "b2": jax.random.uniform(k4, (D_OUT,), jnp.float32, -bound2, bound2),
    }


if __name__ == "__main__":
    key = jax.random.PRNGKey(0)
    k_params, k_w, k_ref, k_w2, k_ref2 = jax.random.split(key, 5)
    params = init_params(k_params)

    # --- small batch: single-block path -------------------------------------
    B = 8
    w = jax.random.normal(k_w, (B, D_W), jnp.float32)
    ref = jax.random.normal(k_ref, (B, D_REF), jnp.float32)
    out = jax.block_until_ready(comp_model_pallas(w, ref, params))
    expected = jax.block_until_ready(comp_model_ref(w, ref, params))
    assert out.shape == (B, D_OUT)
    assert jnp.allclose(out, expected, atol=1e-4, rtol=1e-4), "mismatch (small batch)"

    # --- larger batch: exercises the tiled / padded grid path ---------------
    B2 = 600                      # not a multiple of the tile -> pad + slice
    w2 = jax.random.normal(k_w2, (B2, D_W), jnp.float32)
    ref2 = jax.random.normal(k_ref2, (B2, D_REF), jnp.float32)
    out2 = jax.block_until_ready(comp_model_pallas(w2, ref2, params, tb=256))
    expected2 = jax.block_until_ready(comp_model_ref(w2, ref2, params))
    assert out2.shape == (B2, D_OUT)
    assert jnp.allclose(out2, expected2, atol=1e-4, rtol=1e-4), "mismatch (tiled batch)"

    print("KERNEL_OK")
</pallas_src>

<mosaic_0001>
module attributes {stable_mosaic.version = 11 : i64} {
  func.func @comp_kernel(%arg0: i32, %arg1: memref<8x600xf32, #tpu.memory_space<vmem>>, %arg2: memref<8x3xf32, #tpu.memory_space<vmem>>, %arg3: memref<600x30xf32, #tpu.memory_space<vmem>>, %arg4: memref<3x30xf32, #tpu.memory_space<vmem>>, %arg5: memref<1x30xf32, #tpu.memory_space<vmem>>, %arg6: memref<30x3xf32, #tpu.memory_space<vmem>>, %arg7: memref<3x3xf32, #tpu.memory_space<vmem>>, %arg8: memref<1x3xf32, #tpu.memory_space<vmem>>, %arg9: memref<8x3xf32, #tpu.memory_space<vmem>>) attributes {dimension_semantics = [#tpu.dimension_semantics<parallel>], iteration_bounds = array<i64: 1>, scalar_prefetch = 0 : i64, scratch_operands = 0 : i64, tpu.core_type = #tpu.core_type<tc>, window_params = [{transform_indices = @transform_0, window_bounds = array<i64: 8, 600>}, {transform_indices = @transform_1, window_bounds = array<i64: 8, 3>}, {pipeline_mode = #tpu.pipeline_mode<synchronous>, transform_indices = @transform_2, window_bounds = array<i64: 600, 30>}, {pipeline_mode = #tpu.pipeline_mode<synchronous>, transform_indices = @transform_3, window_bounds = array<i64: 3, 30>}, {pipeline_mode = #tpu.pipeline_mode<synchronous>, transform_indices = @transform_4, window_bounds = array<i64: 1, 30>}, {pipeline_mode = #tpu.pipeline_mode<synchronous>, transform_indices = @transform_5, window_bounds = array<i64: 30, 3>}, {pipeline_mode = #tpu.pipeline_mode<synchronous>, transform_indices = @transform_6, window_bounds = array<i64: 3, 3>}, {pipeline_mode = #tpu.pipeline_mode<synchronous>, transform_indices = @transform_7, window_bounds = array<i64: 1, 3>}, {transform_indices = @transform_8, window_bounds = array<i64: 8, 3>}]} {
    %c0 = arith.constant 0 : index
    %c0_0 = arith.constant 0 : index
    %0 = vector.load %arg2[%c0, %c0_0] : memref<8x3xf32, #tpu.memory_space<vmem>>, vector<8x3xf32>
    %c0_1 = arith.constant 0 : index
    %c0_2 = arith.constant 0 : index
    %1 = vector.load %arg1[%c0_1, %c0_2] : memref<8x600xf32, #tpu.memory_space<vmem>>, vector<8x600xf32>
    %c0_3 = arith.constant 0 : index
    %c0_4 = arith.constant 0 : index
    %2 = vector.load %arg3[%c0_3, %c0_4] : memref<600x30xf32, #tpu.memory_space<vmem>>, vector<600x30xf32>
    %cst = arith.constant dense<0.000000e+00> : vector<8x30xf32>
    %3 = tpu.matmul %1, %2, %cst {dimension_numbers = #tpu.dot_dimension_numbers<[1], [0], [0], [1], [0, 0, 1, 1], [], []>} : vector<8x600xf32>, vector<600x30xf32>, vector<8x30xf32> -> vector<8x30xf32>
    %c0_5 = arith.constant 0 : index
    %c0_6 = arith.constant 0 : index
    %4 = vector.load %arg5[%c0_5, %c0_6] : memref<1x30xf32, #tpu.memory_space<vmem>>, vector<1x30xf32>
    %5 = vector.broadcast %4 : vector<1x30xf32> to vector<8x30xf32>
    %6 = arith.addf %3, %5 : vector<8x30xf32>
    %c0_7 = arith.constant 0 : index
    %c0_8 = arith.constant 0 : index
    %7 = vector.load %arg4[%c0_7, %c0_8] : memref<3x30xf32, #tpu.memory_space<vmem>>, vector<3x30xf32>
    %8 = vector.extract_strided_slice %0 {offsets = [0, 0], sizes = [8, 1], strides = [1, 1]} : vector<8x3xf32> to vector<8x1xf32>
    %9 = vector.extract_strided_slice %7 {offsets = [0, 0], sizes = [1, 30], strides = [1, 1]} : vector<3x30xf32> to vector<1x30xf32>
    %10 = vector.broadcast %8 : vector<8x1xf32> to vector<8x30xf32>
    %11 = vector.broadcast %9 : vector<1x30xf32> to vector<8x30xf32>
    %12 = arith.mulf %10, %11 : vector<8x30xf32>
    %13 = arith.addf %6, %12 : vector<8x30xf32>
    %14 = vector.extract_strided_slice %0 {offsets = [0, 1], sizes = [8, 1], strides = [1, 1]} : vector<8x3xf32> to vector<8x1xf32>
    %15 = vector.extract_strided_slice %7 {offsets = [1, 0], sizes = [1, 30], strides = [1, 1]} : vector<3x30xf32> to vector<1x30xf32>
    %16 = vector.broadcast %14 : vector<8x1xf32> to vector<8x30xf32>
    %17 = vector.broadcast %15 : vector<1x30xf32> to vector<8x30xf32>
    %18 = arith.mulf %16, %17 : vector<8x30xf32>
    %19 = arith.addf %13, %18 : vector<8x30xf32>
    %20 = vector.extract_strided_slice %0 {offsets = [0, 2], sizes = [8, 1], strides = [1, 1]} : vector<8x3xf32> to vector<8x1xf32>
    %21 = vector.extract_strided_slice %7 {offsets = [2, 0], sizes = [1, 30], strides = [1, 1]} : vector<3x30xf32> to vector<1x30xf32>
    %22 = vector.broadcast %20 : vector<8x1xf32> to vector<8x30xf32>
    %23 = vector.broadcast %21 : vector<1x30xf32> to vector<8x30xf32>
    %24 = arith.mulf %22, %23 : vector<8x30xf32>
    %25 = arith.addf %19, %24 : vector<8x30xf32>
    %cst_9 = arith.constant 0.000000e+00 : f32
    %26 = vector.broadcast %cst_9 : f32 to vector<8x30xf32>
    %27 = arith.maximumf %25, %26 : vector<8x30xf32>
    %c0_10 = arith.constant 0 : index
    %c0_11 = arith.constant 0 : index
    %28 = vector.load %arg6[%c0_10, %c0_11] : memref<30x3xf32, #tpu.memory_space<vmem>>, vector<30x3xf32>
    %cst_12 = arith.constant dense<0.000000e+00> : vector<8x3xf32>
    %29 = tpu.matmul %27, %28, %cst_12 {dimension_numbers = #tpu.dot_dimension_numbers<[1], [0], [0], [1], [0, 0, 1, 1], [], []>} : vector<8x30xf32>, vector<30x3xf32>, vector<8x3xf32> -> vector<8x3xf32>
    %c0_13 = arith.constant 0 : index
    %c0_14 = arith.constant 0 : index
    %30 = vector.load %arg8[%c0_13, %c0_14] : memref<1x3xf32, #tpu.memory_space<vmem>>, vector<1x3xf32>
    %31 = vector.broadcast %30 : vector<1x3xf32> to vector<8x3xf32>
    %32 = arith.addf %29, %31 : vector<8x3xf32>
    %c0_15 = arith.constant 0 : index
    %c0_16 = arith.constant 0 : index
    %33 = vector.load %arg7[%c0_15, %c0_16] : memref<3x3xf32, #tpu.memory_space<vmem>>, vector<3x3xf32>
    %34 = vector.extract_strided_slice %0 {offsets = [0, 0], sizes = [8, 1], strides = [1, 1]} : vector<8x3xf32> to vector<8x1xf32>
    %35 = vector.extract_strided_slice %33 {offsets = [0, 0], sizes = [1, 3], strides = [1, 1]} : vector<3x3xf32> to vector<1x3xf32>
    %36 = vector.broadcast %34 : vector<8x1xf32> to vector<8x3xf32>
    %37 = vector.broadcast %35 : vector<1x3xf32> to vector<8x3xf32>
    %38 = arith.mulf %36, %37 : vector<8x3xf32>
    %39 = arith.addf %32, %38 : vector<8x3xf32>
    %40 = vector.extract_strided_slice %0 {offsets = [0, 1], sizes = [8, 1], strides = [1, 1]} : vector<8x3xf32> to vector<8x1xf32>
    %41 = vector.extract_strided_slice %33 {offsets = [1, 0], sizes = [1, 3], strides = [1, 1]} : vector<3x3xf32> to vector<1x3xf32>
    %42 = vector.broadcast %40 : vector<8x1xf32> to vector<8x3xf32>
    %43 = vector.broadcast %41 : vector<1x3xf32> to vector<8x3xf32>
    %44 = arith.mulf %42, %43 : vector<8x3xf32>
    %45 = arith.addf %39, %44 : vector<8x3xf32>
    %46 = vector.extract_strided_slice %0 {offsets = [0, 2], sizes = [8, 1], strides = [1, 1]} : vector<8x3xf32> to vector<8x1xf32>
    %47 = vector.extract_strided_slice %33 {offsets = [2, 0], sizes = [1, 3], strides = [1, 1]} : vector<3x3xf32> to vector<1x3xf32>
    %48 = vector.broadcast %46 : vector<8x1xf32> to vector<8x3xf32>
    %49 = vector.broadcast %47 : vector<1x3xf32> to vector<8x3xf32>
    %50 = arith.mulf %48, %49 : vector<8x3xf32>
    %51 = arith.addf %45, %50 : vector<8x3xf32>
    %c0_17 = arith.constant 0 : index
    %c0_18 = arith.constant 0 : index
    %52 = vector.load %arg9[%c0_17, %c0_18] : memref<8x3xf32, #tpu.memory_space<vmem>>, vector<8x3xf32>
    tpu.vector_store %arg9[%c0_17, %c0_18], %51 {strides = array<i32>} : memref<8x3xf32, #tpu.memory_space<vmem>>, vector<8x3xf32>,
    return
  }
  func.func @transform_0(%arg0: i32) -> (i32, i32) {
    %c0_i32 = arith.constant 0 : i32
    %c0_i32_0 = arith.constant 0 : i32
    return %arg0, %c0_i32 : i32, i32
  }
  func.func @transform_1(%arg0: i32) -> (i32, i32) {
    %c0_i32 = arith.constant 0 : i32
    %c0_i32_0 = arith.constant 0 : i32
    return %arg0, %c0_i32 : i32, i32
  }
  func.func @transform_2(%arg0: i32) -> (i32, i32) {
    %c0_i32 = arith.constant 0 : i32
    %c0_i32_0 = arith.constant 0 : i32
    %c0_i32_1 = arith.constant 0 : i32
    return %c0_i32, %c0_i32_0 : i32, i32
  }
  func.func @transform_3(%arg0: i32) -> (i32, i32) {
    %c0_i32 = arith.constant 0 : i32
    %c0_i32_0 = arith.constant 0 : i32
    %c0_i32_1 = arith.constant 0 : i32
    return %c0_i32, %c0_i32_0 : i32, i32
  }
  func.func @transform_4(%arg0: i32) -> (i32, i32) {
    %c0_i32 = arith.constant 0 : i32
    %c0_i32_0 = arith.constant 0 : i32
    %c0_i32_1 = arith.constant 0 : i32
    return %c0_i32, %c0_i32_0 : i32, i32
  }
  func.func @transform_5(%arg0: i32) -> (i32, i32) {
    %c0_i32 = arith.constant 0 : i32
    %c0_i32_0 = arith.constant 0 : i32
    %c0_i32_1 = arith.constant 0 : i32
    return %c0_i32, %c0_i32_0 : i32, i32
  }
  func.func @transform_6(%arg0: i32) -> (i32, i32) {
    %c0_i32 = arith.constant 0 : i32
    %c0_i32_0 = arith.constant 0 : i32
    %c0_i32_1 = arith.constant 0 : i32
    return %c0_i32, %c0_i32_0 : i32, i32
  }
  func.func @transform_7(%arg0: i32) -> (i32, i32) {
    %c0_i32 = arith.constant 0 : i32
    %c0_i32_0 = arith.constant 0 : i32
    %c0_i32_1 = arith.constant 0 : i32
    return %c0_i32, %c0_i32_0 : i32, i32
  }
  func.func @transform_8(%arg0: i32) -> (i32, i32) {
    %c0_i32 = arith.constant 0 : i32
    %c0_i32_0 = arith.constant 0 : i32
    return %arg0, %c0_i32 : i32, i32
  }
}

</mosaic_0001>

<bundles_post_ra>
// kernel: comp_model_pallas.1
= control target key start
LH: loop header
LB: loop body
LE: loop exit
PB: predicated region body
PF: predicated region fallthrough
CT: control target
= control target key end

     0   :  { %v703_v7 = vmov 0   ;;  %v704_v8 = vmov 2   ;;  %vm707_vm0 = vmmov 0   ;;  %vm117_vm1 = vcmask 719872   ;;  %s1027_s2 = inlined_call_operand.vmem [shape: f32[600,30], index: 2, kind: input, shape index: {}]   ;;  %s1028_s0 = inlined_call_operand.vmem [shape: f32[8,600], index: 0, kind: input, shape index: {}]   ;;  %s1029_s1 = inlined_call_operand.vmem [shape: f32[8,3], index: 1, kind: input, shape index: {}]   ;;  %s1030_s5 = inlined_call_operand.vmem [shape: f32[30,3], index: 5, kind: input, shape index: {}]   ;;  %s1031_s6 = inlined_call_operand.vmem [shape: f32[3,3], index: 6, kind: input, shape index: {}]   ;;  %s1032_s4 = inlined_call_operand.vmem [shape: f32[1,30], index: 4, kind: input, shape index: {}]   ;;  %s1033_s3 = inlined_call_operand.vmem [shape: f32[3,30], index: 3, kind: input, shape index: {}]   ;;  %s1034_s7 = inlined_call_operand.vmem [shape: f32[1,3], index: 7, kind: input, shape index: {}]   ;;  %s1035_s8 = inlined_call_operand.vmem [shape: f32[8,3], index: 8, kind: output, shape index: {}]  }
   0x1   :  { %v51_v0 = vld [vmem:[%s1027_s2 + $0x80] sm:$0xff]  ;;  %v52_v1 = vld [vmem:[%s1027_s2 + $0x88] sm:$0xff]  ;;  %699 = vset.pattern.permute.xlu0 %v703_v7  ;;  %701 = vset.pattern.permute.xlu1 %v704_v8  ;;  %v53_v13 = vld [vmem:[%s1027_s2 + $0x90] sm:$0xff]  ;;  %vm379_vm2 = vcmask 1045504   ;;  %vm709_vm3 = vmmov 1   ;;  %vm375_vm5 = vcmask 244736  }
   0x2   :  { %v35_v2 = vld [vmem:[%s1027_s2] sm:$0xff]  ;;  %v606_v3 = vpack.c.bf16 %v52_v1, %v51_v0  ;;  %v36_v4 = vld [vmem:[%s1027_s2 + $0x8] sm:$0xff]  ;;  %v54_v15 = vld [vmem:[%s1027_s2 + $0x98] sm:$0xff]  ;;  %vm472_vm6 = vcmask 23552  }
   0x3   :  { %v83_v5 = vld [vmem:[%s1027_s2 + $0x180] sm:$0xff]  ;;  %v84_v6 = vld [vmem:[%s1027_s2 + $0x188] sm:$0xff]  ;;  %v608_v9 = vpack.c.bf16 %v36_v4, %v35_v2  ;;  %v37_v16 = vld [vmem:[%s1027_s2 + $0x10] sm:$0xff]  ;;  %v610_v18 = vpack.c.bf16 %v54_v15, %v53_v13 }
   0x4   :  { %v638_v10 = vpack.c.bf16 %v84_v6, %v83_v5  ;;  %v67_v11 = vld [vmem:[%s1027_s2 + $0x100] sm:$0xff]  ;;  %v68_v12 = vld [vmem:[%s1027_s2 + $0x108] sm:$0xff]  ;;  %607 = vmatprep.subr.bf16.mxu0 %v606_v3  ;;  %v38_v17 = vld [vmem:[%s1027_s2 + $0x18] sm:$0xff] }
   0x5   :  { %v640_v14 = vpack.c.bf16 %v68_v12, %v67_v11  ;;  %609 = vmatpush3.bf16.msra.mxu0 %v608_v9  ;;  %v612_v19 = vpack.c.bf16 %v38_v17, %v37_v16  ;;  %v85_v20 = vld [vmem:[%s1027_s2 + $0x190] sm:$0xff]  ;;  %v86_v21 = vld [vmem:[%s1027_s2 + $0x198] sm:$0xff]  ;;  %v55_v25 = vld [vmem:[%s1027_s2 + $0xa0] sm:$0xff] }
   0x6   :  { %639 = vmatprep.subr.bf16.mxu1 %v638_v10  ;;  %v69_v22 = vld [vmem:[%s1027_s2 + $0x110] sm:$0xff]  ;;  %v642_v23 = vpack.c.bf16 %v86_v21, %v85_v20  ;;  %v70_v24 = vld [vmem:[%s1027_s2 + $0x118] sm:$0xff]  ;;  %v56_v26 = vld [vmem:[%s1027_s2 + $0xa8] sm:$0xff]  ;;  %611 = vmatprep.subr.bf16.mxu0 %v610_v18 }
   0x7   :  { %641 = vmatpush3.bf16.msra.mxu1 %v640_v14  ;;  %v644_v27 = vpack.c.bf16 %v70_v24, %v69_v22  ;;  %v614_v28 = vpack.c.bf16 %v56_v26, %v55_v25  ;;  %v39_v29 = vld [vmem:[%s1027_s2 + $0x20] sm:$0xff]  ;;  %v40_v30 = vld [vmem:[%s1027_s2 + $0x28] sm:$0xff]  ;;  %v57_v37 = vld [vmem:[%s1027_s2 + $0xb0] sm:$0xff] }
   0x8   :  { %v87_v31 = vld [vmem:[%s1027_s2 + $0x1a0] sm:$0xff]  ;;  %643 = vmatprep.subr.bf16.mxu1 %v642_v23  ;;  %v88_v32 = vld [vmem:[%s1027_s2 + $0x1a8] sm:$0xff]  ;;  %v616_v35 = vpack.c.bf16 %v40_v30, %v39_v29  ;;  %v58_v38 = vld [vmem:[%s1027_s2 + $0xb8] sm:$0xff] }
   0x9   :  { %v71_v33 = vld [vmem:[%s1027_s2 + $0x120] sm:$0xff]  ;;  %v72_v34 = vld [vmem:[%s1027_s2 + $0x128] sm:$0xff]  ;;  %613 = vmatpush3.bf16.msra.mxu0 %v612_v19  ;;  %v646_v36 = vpack.c.bf16 %v88_v32, %v87_v31  ;;  %v41_v39 = vld [vmem:[%s1027_s2 + $0x30] sm:$0xff]  ;;  %v618_v41 = vpack.c.bf16 %v58_v38, %v57_v37 }
   0xa   :  { %615 = vmatprep.subr.bf16.mxu0 %v614_v28  ;;  %v648_v40 = vpack.c.bf16 %v72_v34, %v71_v33  ;;  %v42_v42 = vld [vmem:[%s1027_s2 + $0x38] sm:$0xff]  ;;  %v89_v43 = vld [vmem:[%s1027_s2 + $0x1b0] sm:$0xff]  ;;  %v59_v48 = vld [vmem:[%s1027_s2 + $0xc0] sm:$0xff] }
   0xb   :  { %645 = vmatpush3.bf16.msra.mxu1 %v644_v27  ;;  %v90_v44 = vld [vmem:[%s1027_s2 + $0x1b8] sm:$0xff]  ;;  %v73_v46 = vld [vmem:[%s1027_s2 + $0x130] sm:$0xff]  ;;  %v60_v49 = vld [vmem:[%s1027_s2 + $0xc8] sm:$0xff]  ;;  %v620_v50 = vpack.c.bf16 %v42_v42, %v41_v39 }
   0xc   :  { %647 = vmatprep.subr.bf16.mxu1 %v646_v36  ;;  %v650_v45 = vpack.c.bf16 %v90_v44, %v89_v43  ;;  %v74_v47 = vld [vmem:[%s1027_s2 + $0x138] sm:$0xff]  ;;  %v91_v51 = vld [vmem:[%s1027_s2 + $0x1c0] sm:$0xff]  ;;  %v92_v52 = vld [vmem:[%s1027_s2 + $0x1c8] sm:$0xff]  ;;  %v622_v54 = vpack.c.bf16 %v60_v49, %v59_v48  ;;  %v706_v43 = vmov 0.0|0.0  }
   0xd   :  { %617 = vmatpush3.bf16.msra.mxu0 %v616_v35  ;;  %v652_v53 = vpack.c.bf16 %v74_v47, %v73_v46  ;;  %v43_v55 = vld [vmem:[%s1027_s2 + $0x40] sm:$0xff]  ;;  %v44_v56 = vld [vmem:[%s1027_s2 + $0x48] sm:$0xff]  ;;  %v654_v58 = vpack.c.bf16 %v92_v52, %v91_v51  ;;  %v61_v60 = vld [vmem:[%s1027_s2 + $0xd0] sm:$0xff] }
   0xe   :  { %619 = vmatprep.subr.bf16.mxu0 %v618_v41  ;;  %v75_v57 = vld [vmem:[%s1027_s2 + $0x140] sm:$0xff]  ;;  %v76_v59 = vld [vmem:[%s1027_s2 + $0x148] sm:$0xff]  ;;  %v62_v61 = vld [vmem:[%s1027_s2 + $0xd8] sm:$0xff]  ;;  %v624_v0 = vpack.c.bf16 %v44_v56, %v43_v55 }
   0xf   :  { %649 = vmatpush3.bf16.msra.mxu1 %v648_v40  ;;  %v93_v62 = vld [vmem:[%s1027_s2 + $0x1d0] sm:$0xff]  ;;  %v94_v63 = vld [vmem:[%s1027_s2 + $0x1d8] sm:$0xff]  ;;  %v656_v1 = vpack.c.bf16 %v76_v59, %v75_v57  ;;  %v626_v2 = vpack.c.bf16 %v62_v61, %v61_v60  ;;  %v63_v9 = vld [vmem:[%s1027_s2 + $0xe0] sm:$0xff]  ;;  %v705_v40 = vmov 1   ;;  %v337_v59 = vlaneseq }
  0x10   :  { %651 = vmatprep.subr.bf16.mxu1 %v650_v45  ;;  %v45_v3 = vld [vmem:[%s1027_s2 + $0x50] sm:$0xff]  ;;  %v46_v4 = vld [vmem:[%s1027_s2 + $0x58] sm:$0xff]  ;;  %v658_v6 = vpack.c.bf16 %v94_v63, %v93_v62  ;;  %v64_v10 = vld [vmem:[%s1027_s2 + $0xe8] sm:$0xff] }
  0x11   :  { %621 = vmatpush3.bf16.msra.mxu0 %v620_v50  ;;  %v77_v5 = vld [vmem:[%s1027_s2 + $0x150] sm:$0xff]  ;;  %v78_v7 = vld [vmem:[%s1027_s2 + $0x158] sm:$0xff]  ;;  %v95_v11 = vld [vmem:[%s1027_s2 + $0x1e0] sm:$0xff]  ;;  %v628_v13 = vpack.c.bf16 %v46_v4, %v45_v3  ;;  %v630_v17 = vpack.c.bf16 %v64_v10, %v63_v9  ;;  %v708_v50 = vmov 0.0   ;;  %v338_v63 = vshrl.u32 %v337_v59, 7 }
  0x12   :  { %623 = vmatprep.subr.bf16.mxu0 %v622_v54  ;;  %v96_v12 = vld [vmem:[%s1027_s2 + $0x1e8] sm:$0xff]  ;;  %v47_v14 = vld [vmem:[%s1027_s2 + $0x60] sm:$0xff]  ;;  %v660_v16 = vpack.c.bf16 %v78_v7, %v77_v5  ;;  %v65_v22 = vld [vmem:[%s1027_s2 + $0xf0] sm:$0xff] }
  0x13   :  { %653 = vmatpush3.bf16.msra.mxu1 %v652_v53  ;;  %v31_v15 = vld [vmem:[%s1028_s0 + $0x8] sm:$0xff]  ;;  %v79_v19 = vld [vmem:[%s1027_s2 + $0x160] sm:$0xff]  ;;  %v662_v21 = vpack.c.bf16 %v96_v12, %v95_v11  ;;  %v66_v23 = vld [vmem:[%s1027_s2 + $0xf8] sm:$0xff]  ;;  %v339_v3 = vsub.s32 0, %v338_v63  ;;  %v359_v4 = vsub.s32 2, %v338_v63  ;;  %v349_v9 = vsub.s32 1, %v338_v63 }
  0x14   :  { %655 = vmatprep.subr.bf16.mxu1 %v654_v58  ;;  %v48_v18 = vld [vmem:[%s1027_s2 + $0x68] sm:$0xff]  ;;  %185 = vmatprep.mubr.f32.mxu0 %v31_v15  ;;  %v33_v24 = vld [vmem:[%s1028_s0 + $0x18] sm:$0xff]  ;;  %v97_v25 = vld [vmem:[%s1027_s2 + $0x1f0] sm:$0xff]  ;;  %v634_v29 = vpack.c.bf16 %v66_v23, %v65_v22 }
  0x15   :  { %625 = vmatpush3.bf16.msra.mxu0 %v624_v0  ;;  %v80_v20 = vld [vmem:[%s1027_s2 + $0x168] sm:$0xff]  ;;  %v98_v26 = vld [vmem:[%s1027_s2 + $0x1f8] sm:$0xff]  ;;  %255 = vmatprep.mubr.f32.mxu1 %v33_v24  ;;  %v632_v27 = vpack.c.bf16 %v48_v18, %v47_v14  ;;  %v49_v30 = vld [vmem:[%s1027_s2 + $0x70] sm:$0xff] }
  0x16   :  { %627 = vmatprep.subr.bf16.mxu0 %v626_v2  ;;  %v664_v28 = vpack.c.bf16 %v80_v20, %v79_v19  ;;  %v50_v31 = vld [vmem:[%s1027_s2 + $0x78] sm:$0xff]  ;;  %v666_v32 = vpack.c.bf16 %v98_v26, %v97_v25  ;;  %v81_v33 = vld [vmem:[%s1027_s2 + $0x170] sm:$0xff]  ;;  %v29_v35 = vld [vmem:[%s1029_s1] sm:$0xff] }
  0x17   :  { %657 = vmatpush3.bf16.msra.mxu1 %v656_v1  ;;  %v82_v34 = vld [vmem:[%s1027_s2 + $0x178] sm:$0xff]  ;;  %334 = vperm.xlu0 %699, %v29_v35   ;;  %v636_v36 = vpack.c.bf16 %v50_v31, %v49_v30  ;;  %v99_v38 = vld [vmem:[%s1027_s2 + $0x200] sm:$0xff]  ;;  %v100_v39 = vld [vmem:[%s1027_s2 + $0x208] sm:$0xff] }
  0x18   :  { %659 = vmatprep.subr.bf16.mxu1 %v658_v6  ;;  %354 = vperm.xlu1 %701, %v29_v35   ;;  %v668_v37 = vpack.c.bf16 %v82_v34, %v81_v33  ;;  %v30_v41 = vld [vmem:[%s1028_s0] sm:$0xff]  ;;  %v671_v42 = vpack.c.bf16 %v100_v39, %v99_v38  ;;  %v32_v44 = vld [vmem:[%s1028_s0 + $0x10] sm:$0xff]  ;;  %v102_v46 = vld [vmem:[%s1027_s2 + $0x218] sm:$0xff] }
  0x19   :  { %629 = vmatpush3.bf16.msra.mxu0 %v628_v13  ;;  %v101_v45 = vld [vmem:[%s1027_s2 + $0x210] sm:$0xff]  ;;  %v103_v48 = vld [vmem:[%s1027_s2 + $0x220] sm:$0xff]  ;;  %v104_v49 = vld [vmem:[%s1027_s2 + $0x228] sm:$0xff] }
  0x1a   :  { %631 = vmatprep.subr.bf16.mxu0 %v630_v17  ;;  %v674_v47 = vpack.c.bf16 %v102_v46, %v101_v45  ;;  %v677_v51 = vpack.c.bf16 %v104_v49, %v103_v48  ;;  %v105_v52 = vld [vmem:[%s1027_s2 + $0x230] sm:$0xff]  ;;  %v106_v53 = vld [vmem:[%s1027_s2 + $0x238] sm:$0xff]  ;;  %v107_v55 = vld [vmem:[%s1027_s2 + $0x240] sm:$0xff] }
  0x1b   :  { %661 = vmatpush3.bf16.msra.mxu1 %v660_v16  ;;  %700 = vset.pattern.permute.xlu0 %v705_v40  ;;  %v680_v54 = vpack.c.bf16 %v106_v53, %v105_v52  ;;  %v109_v57 = vld [vmem:[%s1027_s2 + $0x250] sm:$0xff]  ;;  %v34_v58 = vld [vmem:[%s1028_s0 + $0x20] sm:$0xff]  ;;  %v365_v61 = vld [vmem:[%s1030_s5 + $0x8] sm:$0xff] }
  0x1c   :  { %663 = vmatprep.subr.bf16.mxu1 %v662_v21  ;;  %344 = vperm.xlu0 %700, %v29_v35   ;;  %v364_v60 = vld [vmem:[%s1030_s5] sm:$0xff]  ;;  %v366_v0 = vld [vmem:[%s1030_s5 + $0x10] sm:$0xff]  ;;  %v367_v1 = vld [vmem:[%s1030_s5 + $0x18] sm:$0x3f] }
  0x1d   :  { %633 = vmatpush3.bf16.msra.mxu0 %v632_v27  ;;  %v686_v62 = vpack.c.bf16 %v365_v61, %v364_v60  ;;  %v689_v2 = vpack.c.bf16 %v367_v1, %v366_v0  ;;  %vm690_vm4 = vmpackc.low %vm379_vm2, %vm709_vm3  ;;  %v453_v5 = vld [vmem:[%s1031_s6] sm:$0x7] }
  0x1e   :  { %635 = vmatprep.subr.bf16.mxu0 %v634_v29  ;;  %v457_v6 = vrot.slane %v453_v5, %v339_v3  ;;  %v469_v7 = vrot.slane %v453_v5, %v359_v4  ;;  %v463_v14 = vrot.slane %v453_v5, %v349_v9  ;;  %v478_v18 = vld [vmem:[%s1032_s4] ss:$0 sm:$0xff] }
  0x1f   :  { %665 = vmatpush3.bf16.msra.mxu1 %v664_v28  ;;  %v331_v26 = vld [vmem:[%s1033_s3] sm:$0x7] }
  0x20   :  { %667 = vmatprep.subr.bf16.mxu1 %v666_v32  ;;  %702 = vset.pattern.permute.xlu0 %v704_v8  ;;  %v108_v8 = vld [vmem:[%s1027_s2 + $0x248] sm:$0xff]  ;;  %v340_v27 = vrot.slane %v331_v26, %v339_v3  ;;  %v350_v28 = vrot.slane %v331_v26, %v349_v9  ;;  %v360_v29 = vrot.slane %v331_v26, %v359_v4  ;;  %v480_v40 = vld [vmem:[%s1034_s7] ss:$0 sm:$0xff] }
  0x21   :  { %637 = vmatpush3.bf16.msra.mxu0 %v636_v36  ;;  %v683_v56 = vpack.c.bf16 %v108_v8, %v107_v55 }
  0x22   :  { %670 = vmatprep.subr.bf16.mxu0 %v706_v43 }
  0x23   :  { %669 = vmatpush3.bf16.msra.mxu1 %v668_v37 }
  0x24   :  { %685 = vmatprep.subr.bf16.mxu1 %v706_v43  ;;  %186 = vmatmul.mubr.f32.vlgmr.msra.gmra.mrb[0].mxu0 %v30_v41 }
  0x25   :  { %672 = vmatpush3.bf16.msra.mxu0 %v671_v42  ;;  %592 = vmatprep.mubr.msk.f32.mxu0 %vm707_vm0, %v708_v50 }
  0x26   :  { %256 = vmatmul.mubr.f32.vlgmr.msra.gmra.mrb[0].mxu1 %v32_v44  ;;  %673 = vmatprep.subr.bf16.mxu0 %v706_v43 }
  0x27   :  { %603 = vmatprep.mubr.msk.f32.mxu1 %vm707_vm0, %v708_v50  ;;  %687 = vmatpush3.bf16.msra.mxu1 %v686_v62 }
  0x28   :  { %688 = vmatprep.subr.bf16.mxu1 %v706_v43 }
  0x29   :  { %675 = vmatpush3.bf16.msra.mxu0 %v674_v47 }
  0x2a   :  { %676 = vmatprep.subr.bf16.mxu0 %v706_v43 }
  0x2b   :  { %691 = vmatpush3.bf16.msk.msra.mxu1 %vm690_vm4, %v689_v2 }
  0x2d   :  { %678 = vmatpush3.bf16.msra.mxu0 %v677_v51 }
  0x2e   :  { %679 = vmatprep.subr.bf16.mxu0 %v706_v43 }
  0x31   :  { %681 = vmatpush3.bf16.msra.mxu0 %v680_v54 }
  0x32   :  { %682 = vmatprep.subr.bf16.mxu0 %v706_v43 }
  0x35   :  { %684 = vmatpush3.bf16.msra.mxu0 %v683_v56 }
  0x36   :  { %590 = vmatprep.subr.mxu0 %v708_v50 }
  0x39   :  { %591 = vmatpush3.msra.mxu0 %v109_v57 }
  0x3a   :  { %593 = vmatmul.mubr.msk.f32.vlgmr.msra.gmra.mrb[2].mxu0 %vm117_vm1, %v34_v58 }
  0x96   :  { %v335_v10 = vpop.permute.xlu0 %334 }
  0x97   :  { %v355_v11 = vpop.permute.xlu1 %354  ;;  %v458_v12 = vmul.f32 %v457_v6, %v335_v10  ;;  %v341_v31 = vmul.f32 %v340_v27, %v335_v10 }
  0x98   :  { %v470_v13 = vmul.f32 %v469_v7, %v355_v11  ;;  %v361_v36 = vmul.f32 %v360_v29, %v355_v11 }
  0x9b   :  { %v345_v15 = vpop.permute.xlu0 %344 }
  0x9c   :  { %v464_v16 = vmul.f32 %v463_v14, %v345_v15  ;;  %v351_v34 = vmul.f32 %v350_v28, %v345_v15 }
  0xf7   :  { %v515_v17 = vpop.f32.mrb[0].mxu0 }
  0xf8   :  { %v516_v19 = vpop.f32.mrb[1].mxu0 }
  0xf9   :  { %v550_v20 = vpop.f32.mrb[0].mxu1  ;;  %v517_v21 = vadd.f32 %v516_v19, %v515_v17 }
  0xfa   :  { %v551_v22 = vpop.f32.mrb[1].mxu1 }
  0xfb   :  { %v552_v23 = vadd.f32 %v551_v22, %v550_v20  ;;  %v188_v24 = vadd.f32 %v517_v21, %v478_v18 }
  0xfd   :  { %v258_v25 = vadd.f32 %v552_v23, %v188_v24 }
 0x10d   :  { %v327_v30 = vpop.f32.mrb[2].mxu0 }
 0x10e   :  { %v328_v32 = vadd.f32 %v327_v30, %v258_v25  ;;  %v594_v33 = vpop.f32.mrb[3].mxu0 }
 0x110   :  { %v342_v35 = vadd.f32 %v341_v31, %v328_v32 }
 0x112   :  { %v352_v37 = vadd.f32 %v351_v34, %v342_v35 }
 0x114   :  { %v362_v38 = vadd.f32 %v361_v36, %v352_v37 }
 0x116   :  { %v363_v39 = vmax.f32 %v362_v38, 0.0 }
 0x118   :  { %604 = vmatmul.mubr.msk.f32.vlgmr.msra.gmra.mrb[2].mxu1 %vm375_vm5, %v363_v39 }
 0x1eb   :  { %v449_v41 = vpop.f32.mrb[2].mxu1 }
 0x1ec   :  { %v450_v42 = vadd.f32 %v480_v40, %v449_v41  ;;  %v605_v43 = vpop.f32.mrb[3].mxu1 }
 0x1ee   :  { %v459_v44 = vadd.f32 %v458_v12, %v450_v42 }
 0x1f0   :  { %v465_v45 = vadd.f32 %v464_v16, %v459_v44 }
 0x1f2   :  { %v471_v46 = vadd.f32 %v470_v13, %v465_v45 }
 0x1f4   :  { %473 = vst.msk [vmem:[%s1035_s8] sm:$0xff] %vm472_vm6, %v471_v46 }

</bundles_post_ra>
